<compile_context>
chip_gen: v7x
topology: tpu7x:2x2x1
jax: 0.10.0
libtpu: 0.0.40
codegen_flags: <defaults>
</compile_context>

<pallas_src>
import jax
import jax.numpy as jnp
from jax.experimental import pallas as pl
from jax.experimental.pallas import tpu as pltpu

IN_DIM = 32
HID_DIM = 256
CLASS_SIZE = 15
OUT_PAD = 128  # lane-dense padded class dimension


def classnet_kernel(x_ref, w1_ref, b1_ref, w2_ref, b2_ref, w3_ref, b3_ref, o_ref):
    # In-kernel f32 -> bf16 cast of the input tile (hidden under the MXU).
    x = x_ref[...].astype(jnp.bfloat16)

    # layer1 (bf16 matmul, f32 accumulation) + bias + ReLU in f32
    h1 = jnp.dot(x, w1_ref[...], preferred_element_type=jnp.float32)
    h1 = jnp.maximum(h1 + b1_ref[...], 0.0)            # (TB, 256) + (1, 256)
    # dropout(p=0.5) is the identity at inference time (module.eval())
    # TODO(synk): training-mode dropout (Bernoulli mask + 1/(1-p) scale) not emitted.

    # layer2 + ReLU
    h2 = jnp.dot(h1.astype(jnp.bfloat16), w2_ref[...],
                 preferred_element_type=jnp.float32)
    h2 = jnp.maximum(h2 + b2_ref[...], 0.0)

    # layer3 (logits), class dim padded to 128; padded columns get a -1e30
    # bias so exp() underflows to exactly 0 and softmax is over the 15 real
    # classes only.
    logits = jnp.dot(h2.astype(jnp.bfloat16), w3_ref[...],
                     preferred_element_type=jnp.float32)
    logits = logits + b3_ref[...]                        # (TB, 128)

    # softmax over dim=1 (classes), numerically stable, f32, exact divide.
    m = jnp.max(logits, axis=-1, keepdims=True)
    e = jnp.exp(logits - m)
    denom = jnp.sum(e, axis=-1, keepdims=True)
    o_ref[...] = (e / denom).astype(o_ref.dtype)


def _round_up(n, m):
    return ((n + m - 1) // m) * m


def _select_tiling(batch, tile_b):
    """Pick (TB, pad_B, n_tiles): TB multiple of 16, balanced across tiles."""
    pad16 = _round_up(batch, 16)
    n_tiles = pl.cdiv(pad16, tile_b)
    # Ensure >=2 grid steps when possible so the "parallel" batch axis can
    # shard across both v7x TensorCores (harmless on v5e/v6e).
    if n_tiles == 1 and pad16 >= 32:
        n_tiles = 2
    tb = _round_up(pl.cdiv(pad16, n_tiles), 16)
    return tb, tb * n_tiles, n_tiles


def classnet_forward(x, params, tile_b=2048):
    """x: (B, 32) float32 -> (B, 15) float32 softmax probabilities."""
    w1, b1, w2, b2, w3, b3 = params
    B = x.shape[0]

    TB, pad_B, n_tiles = _select_tiling(B, tile_b)
    if pad_B != B:
        x = jnp.pad(x, ((0, pad_B - B), (0, 0)))

    # bf16 weights for the MXU; biases stay f32. W3/b3 padded to 128 classes.
    w1_bf = w1.astype(jnp.bfloat16)
    w2_bf = w2.astype(jnp.bfloat16)
    w3_bf = jnp.zeros((HID_DIM, OUT_PAD), jnp.bfloat16)
    w3_bf = w3_bf.at[:, :CLASS_SIZE].set(w3.astype(jnp.bfloat16))
    b3_pad = jnp.full((1, OUT_PAD), -1e30, jnp.float32)
    b3_pad = b3_pad.at[:, :CLASS_SIZE].set(b3)

    # VMEM-resident operands: constant block index across the batch grid.
    resident = lambda shape: pl.BlockSpec(shape, lambda i: (0, 0))

    out = pl.pallas_call(
        classnet_kernel,
        out_shape=jax.ShapeDtypeStruct((pad_B, OUT_PAD), jnp.float32),
        grid=(n_tiles,),
        in_specs=[
            pl.BlockSpec((TB, IN_DIM), lambda i: (i, 0)),   # x: batch-tiled, f32
            resident((IN_DIM, HID_DIM)),                    # w1 (resident)
            resident((1, HID_DIM)),                         # b1
            resident((HID_DIM, HID_DIM)),                   # w2
            resident((1, HID_DIM)),                         # b2
            resident((HID_DIM, OUT_PAD)),                   # w3 (padded, resident)
            resident((1, OUT_PAD)),                         # b3 (padded)
        ],
        out_specs=pl.BlockSpec((TB, OUT_PAD), lambda i: (i, 0)),  # lane-dense
        compiler_params=pltpu.CompilerParams(
            dimension_semantics=("parallel",),
            vmem_limit_bytes=48 << 20,
        ),
    )(x, w1_bf, b1, w2_bf, b2, w3_bf, b3_pad)

    return out[:B, :CLASS_SIZE]


def init_params(key):
    """Deterministic init matching nn.Linear shapes.

    PyTorch stores Linear weight as (out, in); we store the transpose
    (in, out) so the kernel does x @ W + b.
    """
    k1, k2, k3, k4, k5, k6 = jax.random.split(key, 6)

    def uniform_linear(kw, kb, fan_in, fan_out):
        bound = 1.0 / jnp.sqrt(fan_in)
        w = jax.random.uniform(kw, (fan_in, fan_out), jnp.float32, -bound, bound)
        b = jax.random.uniform(kb, (1, fan_out), jnp.float32, -bound, bound)
        return w, b

    w1, b1 = uniform_linear(k1, k2, IN_DIM, HID_DIM)
    w2, b2 = uniform_linear(k3, k4, HID_DIM, HID_DIM)
    w3, b3 = uniform_linear(k5, k6, HID_DIM, CLASS_SIZE)
    return (w1, b1, w2, b2, w3, b3)


def reference_forward(x, params):
    """Pure-JAX reference with matching bf16-input / f32-accumulate matmuls."""
    w1, b1, w2, b2, w3, b3 = params

    def bdot(a, w):
        return jax.lax.dot(a.astype(jnp.bfloat16), w.astype(jnp.bfloat16),
                           preferred_element_type=jnp.float32)

    h = jnp.maximum(bdot(x, w1) + b1, 0.0)
    h = jnp.maximum(bdot(h, w2) + b2, 0.0)
    logits = bdot(h, w3) + b3
    return jax.nn.softmax(logits, axis=1)


if __name__ == "__main__":
    key = jax.random.PRNGKey(0)
    kp, kx = jax.random.split(key)
    params = init_params(kp)

    B = 8  # small batch
    x = jax.random.normal(kx, (B, IN_DIM), jnp.float32)

    out = classnet_forward(x, params)
    out = jax.block_until_ready(out)

    ref = reference_forward(x, params)
    assert out.shape == (B, CLASS_SIZE)
    assert jnp.allclose(out, ref, atol=2e-3, rtol=1e-2), "mismatch vs reference"
    assert jnp.allclose(jnp.sum(out, axis=1), 1.0, atol=2e-3), "softmax rows must sum to 1"

    print("KERNEL_OK")
</pallas_src>

<mosaic_0001>
module attributes {stable_mosaic.version = 11 : i64} {
  func.func @classnet_kernel(%arg0: i32, %arg1: memref<16x32xf32, #tpu.memory_space<vmem>>, %arg2: memref<32x256xbf16, #tpu.memory_space<vmem>>, %arg3: memref<1x256xf32, #tpu.memory_space<vmem>>, %arg4: memref<256x256xbf16, #tpu.memory_space<vmem>>, %arg5: memref<1x256xf32, #tpu.memory_space<vmem>>, %arg6: memref<256x128xbf16, #tpu.memory_space<vmem>>, %arg7: memref<1x128xf32, #tpu.memory_space<vmem>>, %arg8: memref<16x128xf32, #tpu.memory_space<vmem>>) attributes {dimension_semantics = [#tpu.dimension_semantics<parallel>], iteration_bounds = array<i64: 1>, scalar_prefetch = 0 : i64, scratch_operands = 0 : i64, tpu.core_type = #tpu.core_type<tc>, window_params = [{transform_indices = @transform_0, window_bounds = array<i64: 16, 32>}, {pipeline_mode = #tpu.pipeline_mode<synchronous>, transform_indices = @transform_1, window_bounds = array<i64: 32, 256>}, {pipeline_mode = #tpu.pipeline_mode<synchronous>, transform_indices = @transform_2, window_bounds = array<i64: 1, 256>}, {pipeline_mode = #tpu.pipeline_mode<synchronous>, transform_indices = @transform_3, window_bounds = array<i64: 256, 256>}, {pipeline_mode = #tpu.pipeline_mode<synchronous>, transform_indices = @transform_4, window_bounds = array<i64: 1, 256>}, {pipeline_mode = #tpu.pipeline_mode<synchronous>, transform_indices = @transform_5, window_bounds = array<i64: 256, 128>}, {pipeline_mode = #tpu.pipeline_mode<synchronous>, transform_indices = @transform_6, window_bounds = array<i64: 1, 128>}, {transform_indices = @transform_7, window_bounds = array<i64: 16, 128>}]} {
    %c0 = arith.constant 0 : index
    %c0_0 = arith.constant 0 : index
    %0 = vector.load %arg1[%c0, %c0_0] : memref<16x32xf32, #tpu.memory_space<vmem>>, vector<16x32xf32>
    %1 = arith.truncf %0 : vector<16x32xf32> to vector<16x32xbf16>
    %c0_1 = arith.constant 0 : index
    %c0_2 = arith.constant 0 : index
    %2 = vector.load %arg2[%c0_1, %c0_2] : memref<32x256xbf16, #tpu.memory_space<vmem>>, vector<32x256xbf16>
    %cst = arith.constant dense<0.000000e+00> : vector<16x256xf32>
    %3 = tpu.matmul %1, %2, %cst {dimension_numbers = #tpu.dot_dimension_numbers<[1], [0], [0], [1], [0, 0, 1, 1], [], []>} : vector<16x32xbf16>, vector<32x256xbf16>, vector<16x256xf32> -> vector<16x256xf32>
    %c0_3 = arith.constant 0 : index
    %c0_4 = arith.constant 0 : index
    %4 = vector.load %arg3[%c0_3, %c0_4] : memref<1x256xf32, #tpu.memory_space<vmem>>, vector<1x256xf32>
    %5 = vector.broadcast %4 : vector<1x256xf32> to vector<16x256xf32>
    %6 = arith.addf %3, %5 : vector<16x256xf32>
    %cst_5 = arith.constant 0.000000e+00 : f32
    %7 = vector.broadcast %cst_5 : f32 to vector<16x256xf32>
    %8 = arith.maximumf %6, %7 : vector<16x256xf32>
    %9 = arith.truncf %8 : vector<16x256xf32> to vector<16x256xbf16>
    %c0_6 = arith.constant 0 : index
    %c0_7 = arith.constant 0 : index
    %10 = vector.load %arg4[%c0_6, %c0_7] : memref<256x256xbf16, #tpu.memory_space<vmem>>, vector<256x256xbf16>
    %cst_8 = arith.constant dense<0.000000e+00> : vector<16x256xf32>
    %11 = tpu.matmul %9, %10, %cst_8 {dimension_numbers = #tpu.dot_dimension_numbers<[1], [0], [0], [1], [0, 0, 1, 1], [], []>} : vector<16x256xbf16>, vector<256x256xbf16>, vector<16x256xf32> -> vector<16x256xf32>
    %c0_9 = arith.constant 0 : index
    %c0_10 = arith.constant 0 : index
    %12 = vector.load %arg5[%c0_9, %c0_10] : memref<1x256xf32, #tpu.memory_space<vmem>>, vector<1x256xf32>
    %13 = vector.broadcast %12 : vector<1x256xf32> to vector<16x256xf32>
    %14 = arith.addf %11, %13 : vector<16x256xf32>
    %cst_11 = arith.constant 0.000000e+00 : f32
    %15 = vector.broadcast %cst_11 : f32 to vector<16x256xf32>
    %16 = arith.maximumf %14, %15 : vector<16x256xf32>
    %17 = arith.truncf %16 : vector<16x256xf32> to vector<16x256xbf16>
    %c0_12 = arith.constant 0 : index
    %c0_13 = arith.constant 0 : index
    %18 = vector.load %arg6[%c0_12, %c0_13] : memref<256x128xbf16, #tpu.memory_space<vmem>>, vector<256x128xbf16>
    %cst_14 = arith.constant dense<0.000000e+00> : vector<16x128xf32>
    %19 = tpu.matmul %17, %18, %cst_14 {dimension_numbers = #tpu.dot_dimension_numbers<[1], [0], [0], [1], [0, 0, 1, 1], [], []>} : vector<16x256xbf16>, vector<256x128xbf16>, vector<16x128xf32> -> vector<16x128xf32>
    %c0_15 = arith.constant 0 : index
    %c0_16 = arith.constant 0 : index
    %20 = vector.load %arg7[%c0_15, %c0_16] : memref<1x128xf32, #tpu.memory_space<vmem>>, vector<1x128xf32>
    %21 = vector.broadcast %20 : vector<1x128xf32> to vector<16x128xf32>
    %22 = arith.addf %19, %21 : vector<16x128xf32>
    %cst_17 = arith.constant dense<0xFF800000> : vector<16xf32>
    %23 = vector.multi_reduction <maximumf>, %22, %cst_17 [1] : vector<16x128xf32> to vector<16xf32>
    %24 = vector.shape_cast %23 : vector<16xf32> to vector<16x1xf32>
    %25 = vector.broadcast %24 : vector<16x1xf32> to vector<16x128xf32>
    %26 = arith.subf %22, %25 : vector<16x128xf32>
    %27 = math.exp %26 : vector<16x128xf32>
    %cst_18 = arith.constant dense<0.000000e+00> : vector<16xf32>
    %28 = vector.multi_reduction <add>, %27, %cst_18 [1] : vector<16x128xf32> to vector<16xf32>
    %29 = vector.shape_cast %28 : vector<16xf32> to vector<16x1xf32>
    %30 = vector.broadcast %29 : vector<16x1xf32> to vector<16x128xf32>
    %31 = arith.divf %27, %30 : vector<16x128xf32>
    %c0_19 = arith.constant 0 : index
    %c0_20 = arith.constant 0 : index
    %32 = vector.load %arg8[%c0_19, %c0_20] : memref<16x128xf32, #tpu.memory_space<vmem>>, vector<16x128xf32>
    tpu.vector_store %arg8[%c0_19, %c0_20], %31 {strides = array<i32>} : memref<16x128xf32, #tpu.memory_space<vmem>>, vector<16x128xf32>,
    return
  }
  func.func @transform_0(%arg0: i32) -> (i32, i32) {
    %c0_i32 = arith.constant 0 : i32
    %c0_i32_0 = arith.constant 0 : i32
    return %arg0, %c0_i32 : i32, i32
  }
  func.func @transform_1(%arg0: i32) -> (i32, i32) {
    %c0_i32 = arith.constant 0 : i32
    %c0_i32_0 = arith.constant 0 : i32
    %c0_i32_1 = arith.constant 0 : i32
    return %c0_i32, %c0_i32_0 : i32, i32
  }
  func.func @transform_2(%arg0: i32) -> (i32, i32) {
    %c0_i32 = arith.constant 0 : i32
    %c0_i32_0 = arith.constant 0 : i32
    %c0_i32_1 = arith.constant 0 : i32
    return %c0_i32, %c0_i32_0 : i32, i32
  }
  func.func @transform_3(%arg0: i32) -> (i32, i32) {
    %c0_i32 = arith.constant 0 : i32
    %c0_i32_0 = arith.constant 0 : i32
    %c0_i32_1 = arith.constant 0 : i32
    return %c0_i32, %c0_i32_0 : i32, i32
  }
  func.func @transform_4(%arg0: i32) -> (i32, i32) {
    %c0_i32 = arith.constant 0 : i32
    %c0_i32_0 = arith.constant 0 : i32
    %c0_i32_1 = arith.constant 0 : i32
    return %c0_i32, %c0_i32_0 : i32, i32
  }
  func.func @transform_5(%arg0: i32) -> (i32, i32) {
    %c0_i32 = arith.constant 0 : i32
    %c0_i32_0 = arith.constant 0 : i32
    %c0_i32_1 = arith.constant 0 : i32
    return %c0_i32, %c0_i32_0 : i32, i32
  }
  func.func @transform_6(%arg0: i32) -> (i32, i32) {
    %c0_i32 = arith.constant 0 : i32
    %c0_i32_0 = arith.constant 0 : i32
    %c0_i32_1 = arith.constant 0 : i32
    return %c0_i32, %c0_i32_0 : i32, i32
  }
  func.func @transform_7(%arg0: i32) -> (i32, i32) {
    %c0_i32 = arith.constant 0 : i32
    %c0_i32_0 = arith.constant 0 : i32
    return %arg0, %c0_i32 : i32, i32
  }
}

</mosaic_0001>

<bundles_post_ra>
// kernel: tpu_custom_call.1
= control target key start
LH: loop header
LB: loop body
LE: loop exit
PB: predicated region body
PF: predicated region fallthrough
CT: control target
= control target key end

     0   :  { %12 = vsyncpa [#allocation3], 0  ;;  %s1070_s0 = inlined_call_operand.hbm [shape: f32[16,32], index: 0, kind: input, shape index: {}]   ;;  %s1071_s1 = inlined_call_operand.hbm [shape: bf16[32,256], index: 1, kind: input, shape index: {}]   ;;  %s1072_s2 = inlined_call_operand.vmem [shape: f32[1,256], index: 2, kind: input, shape index: {}]   ;;  %s1073_s3 = inlined_call_operand.hbm [shape: bf16[256,256], index: 3, kind: input, shape index: {}]   ;;  %s1074_s4 = inlined_call_operand.vmem [shape: f32[1,256], index: 4, kind: input, shape index: {}]   ;;  %s1075_s5 = inlined_call_operand.hbm [shape: bf16[256,128], index: 5, kind: input, shape index: {}]   ;;  %s1076_s6 = inlined_call_operand.vmem [shape: f32[1,128], index: 6, kind: input, shape index: {}]   ;;  %s1077_s7 = inlined_call_operand.hbm [shape: f32[16,128], index: 7, kind: output, shape index: {}]  }
   0x1   :  { %13 = vsyncpa [#allocation6], 0 }
   0x2   :  { %14 = vsyncpa [#allocation9], 0 }
   0x3   :  { %15 = vsyncpa [#allocation4], 0  ;;  %s925_s24 = smov [#allocation5]   ;;  %s926_s26 = smov [#allocation2]  }
   0x4   :  { %s33_s25 = sshll.u32 %s925_s24, 4  ;;  %s21_s27 = sshll.u32 %s926_s26, 4  ;;  %s34_s25 = int_to_ptr.vmem [resolvable:$true] %s33_s25  ;;  %s975_s27 = int_to_ptr.vmem [resolvable:$true] %s21_s27 }
   0x5   :  { %s807_s30 = scalar_lea.hbm %s1071_s1, 512 }
   0x6   :  { %p808_p0 = scmp.ne.s32.totalorder %s1071_s1, %s807_s30  ;;  %p811_p1 = scmp.lt.u32.totalorder %s807_s30, %s1071_s1 }
   0x8   :  { %p813_p2 = pnand %p811_p1, %p808_p0 }
   0xa   :  { %816 = shalt.err (!%p813_p2)
}
   0xb   :  { %s817_s12 = scalar_lea.vmem %s34_s25, 512  ;;  %p822_p4 = scmp.lt.s32.totalorder %s34_s25, %s34_s25 }
   0xc   :  { %p818_p3 = scmp.ne.s32.totalorder %s34_s25, %s817_s12  ;;  %p823_p5 = scmp.lt.s32.totalorder %s817_s12, %s817_s12 }
   0xe   :  { %p824_p6 = por %p823_p5, %p822_p4 }
  0x10   :  { %p825_p7 = pnand %p824_p6, %p818_p3 }
  0x12   :  { %828 = shalt.err (!%p825_p7)
}
  0x13   :  { %s927_s13 = smov 128   ;;  %s928_s14 = smov 8  }
  0x14   :  { %39 = dma.hbm_to_vmem [thread:$0]  %s1071_s1, 512, %s34_s25, [#allocation6], %s927_s13, %s927_s13, %s928_s14  }
  0x15   :  { %s829_s19 = scalar_lea.hbm %s1070_s0, 256 }
  0x16   :  { %p830_p8 = scmp.ne.s32.totalorder %s1070_s0, %s829_s19  ;;  %p833_p9 = scmp.lt.u32.totalorder %s829_s19, %s1070_s0 }
  0x18   :  { %p835_p10 = pnand %p833_p9, %p830_p8 }
  0x1a   :  { %838 = shalt.err (!%p835_p10)
}
  0x1b   :  { %s839_s24 = scalar_lea.vmem %s975_s27, 256  ;;  %p844_p12 = scmp.lt.s32.totalorder %s975_s27, %s975_s27 }
  0x1c   :  { %p840_p11 = scmp.ne.s32.totalorder %s975_s27, %s839_s24  ;;  %p845_p13 = scmp.lt.s32.totalorder %s839_s24, %s839_s24 }
  0x1e   :  { %p846_p0 = por %p845_p13, %p844_p12 }
  0x20   :  { %p847_p1 = pnand %p846_p0, %p840_p11 }
  0x22   :  { %850 = shalt.err (!%p847_p1)
}
  0x23   :  { %27 = dma.hbm_to_vmem [thread:$0]  %s1070_s0, 256, %s975_s27, [#allocation3], %s927_s13, %s927_s13, %s928_s14  }
  0x24   :  { %s929_s26 = smov [#allocation7]   ;;  %s930_s29 = smov [#allocation8]  }
  0x25   :  { %s47_s28 = sshll.u32 %s929_s26, 4  ;;  %s61_s30 = sshll.u32 %s930_s29, 4  ;;  %s48_s28 = int_to_ptr.vmem [resolvable:$true] %s47_s28  ;;  %s1012_s30 = int_to_ptr.vmem [resolvable:$true] %s61_s30 }
  0x26   :  { %s851_s10 = scalar_lea.hbm %s1073_s3, 4096 }
  0x27   :  { %p852_p2 = scmp.ne.s32.totalorder %s1073_s3, %s851_s10  ;;  %p855_p3 = scmp.lt.u32.totalorder %s851_s10, %s1073_s3 }
  0x29   :  { %p857_p4 = pnand %p855_p3, %p852_p2 }
  0x2b   :  { %860 = shalt.err (!%p857_p4)
}
  0x2c   :  { %s861_s0 = scalar_lea.vmem %s48_s28, 4096  ;;  %p866_p6 = scmp.lt.s32.totalorder %s48_s28, %s48_s28 }
  0x2d   :  { %p862_p5 = scmp.ne.s32.totalorder %s48_s28, %s861_s0  ;;  %p867_p7 = scmp.lt.s32.totalorder %s861_s0, %s861_s0 }
  0x2f   :  { %p868_p8 = por %p867_p7, %p866_p6 }
  0x31   :  { %p869_p9 = pnand %p868_p8, %p862_p5 }
  0x33   :  { %872 = shalt.err (!%p869_p9)
}
  0x34   :  { %53 = dma.hbm_to_vmem [thread:$0]  %s1073_s3, 4096, %s48_s28, [#allocation6], %s927_s13, %s927_s13, %s928_s14  }
  0x35   :  { %s873_s20 = scalar_lea.hbm %s1075_s5, 2048 }
  0x36   :  { %p874_p10 = scmp.ne.s32.totalorder %s1075_s5, %s873_s20  ;;  %p877_p11 = scmp.lt.u32.totalorder %s873_s20, %s1075_s5 }
  0x38   :  { %p879_p12 = pnand %p877_p11, %p874_p10 }
  0x3a   :  { %882 = shalt.err (!%p879_p12)
}
  0x3b   :  { %s883_s1 = scalar_lea.vmem %s1012_s30, 2048  ;;  %p888_p0 = scmp.lt.s32.totalorder %s1012_s30, %s1012_s30 }
  0x3c   :  { %p884_p13 = scmp.ne.s32.totalorder %s1012_s30, %s883_s1  ;;  %p889_p1 = scmp.lt.s32.totalorder %s883_s1, %s883_s1 }
  0x3e   :  { %p890_p2 = por %p889_p1, %p888_p0 }
  0x40   :  { %p891_p3 = pnand %p890_p2, %p884_p13 }
  0x42   :  { %894 = shalt.err (!%p891_p3)
}
  0x43   :  { %s931_s3 = smov 64   ;;  %s932_s25 = smov 4  }
  0x44   :  { %67 = dma.hbm_to_vmem [thread:$0]  %s1075_s5, 2048, %s1012_s30, [#allocation9], %s931_s3, %s931_s3, %s932_s25  }
  0x45   :  { %917 = dma.done.wait [#allocation3], 256  }
  0x46   :  { %918 = vsyncadd [#allocation3], 4294967040 }
  0x47   :  { %919 = dma.done.wait [#allocation6], 4608  }
  0x48   :  { %920 = vsyncadd [#allocation6], 4294962688 }
  0x49   :  { %921 = dma.done.wait [#allocation9], 2048  }
  0x4a   :  { %922 = vsyncadd [#allocation9], 4294965248  ;;  %v933_v0 = vmov 0   ;;  %v729_v1 = vld [vmem:[#allocation5 + $0x4] ss:$8 sps:$4 sm:$0xff]   ;;  %v83_v5 = vld [vmem:[#allocation2] sm:$0xff]  ;;  %v92_v51 = vlaneseq }
  0x4b   :  { %158 = vmatprep.mubr.bf16.mxu0 %v933_v0  ;;  %v731_v2 = vld [vmem:[#allocation5] ss:$8 sps:$4 sm:$0xff]   ;;  %126 = vmatprep.subr.bf16.mxu0 %v729_v1  ;;  %v732_v3 = vld [vmem:[#allocation5 + $0x14] ss:$8 sps:$4 sm:$0xff]   ;;  %v734_v4 = vld [vmem:[#allocation5 + $0x10] ss:$8 sps:$4 sm:$0xff]  }
  0x4c   :  { %127 = vmatpush1.bf16.msra.mxu0 %v731_v2  ;;  %v84_v6 = vld [vmem:[#allocation2 + $0x8] sm:$0xff]  ;;  %v735_v7 = vld [vmem:[#allocation7 + $0x4] ss:$8 sps:$4 sm:$0xff]   ;;  %v737_v8 = vld [vmem:[#allocation7] ss:$8 sps:$4 sm:$0xff]   ;;  %vm122_vm0 = vcmask 261120  }
  0x4d   :  { %128 = vmatprep.subr.bf16.mxu0 %v732_v3  ;;  %v738_v9 = vld [vmem:[#allocation7 + $0x14] ss:$8 sps:$4 sm:$0xff]   ;;  %v85_v10 = vpack.c.bf16 %v84_v6, %v83_v5  ;;  %379 = vmatprep.subr.bf16.mxu1 %v735_v7  ;;  %v740_v11 = vld [vmem:[#allocation7 + $0x10] ss:$8 sps:$4 sm:$0xff]   ;;  %v741_v12 = vld [vmem:[#allocation7 + $0x24] ss:$8 sps:$4 sm:$0xff]  }
  0x4e   :  { %380 = vmatpush1.bf16.msra.mxu1 %v737_v8  ;;  %v743_v13 = vld [vmem:[#allocation7 + $0x20] ss:$8 sps:$4 sm:$0xff]   ;;  %v744_v14 = vld [vmem:[#allocation7 + $0x34] ss:$8 sps:$4 sm:$0xff]   ;;  %v746_v15 = vld [vmem:[#allocation7 + $0x30] ss:$8 sps:$4 sm:$0xff]  }
  0x4f   :  { %381 = vmatprep.subr.bf16.mxu1 %v738_v9  ;;  %v747_v16 = vld [vmem:[#allocation7 + $0x44] ss:$8 sps:$4 sm:$0xff]   ;;  %v749_v17 = vld [vmem:[#allocation7 + $0x40] ss:$8 sps:$4 sm:$0xff]   ;;  %v750_v18 = vld [vmem:[#allocation7 + $0x54] ss:$8 sps:$4 sm:$0xff]  }
  0x50   :  { %129 = vmatpush1.bf16.msra.mxu0 %v734_v4  ;;  %v752_v19 = vld [vmem:[#allocation7 + $0x50] ss:$8 sps:$4 sm:$0xff]   ;;  %v753_v20 = vld [vmem:[#allocation7 + $0x64] ss:$8 sps:$4 sm:$0xff]   ;;  %v755_v21 = vld [vmem:[#allocation7 + $0x60] ss:$8 sps:$4 sm:$0xff]  }
  0x51   :  { %v756_v22 = vld [vmem:[#allocation7 + $0x74] ss:$8 sps:$4 sm:$0xff]   ;;  %v758_v23 = vld [vmem:[#allocation7 + $0x70] ss:$8 sps:$4 sm:$0xff]   ;;  %v759_v24 = vld [vmem:[#allocation7 + $0x84] ss:$8 sps:$4 sm:$0xff]  }
  0x52   :  { %382 = vmatpush1.bf16.msra.mxu1 %v740_v11  ;;  %v761_v25 = vld [vmem:[#allocation7 + $0x80] ss:$8 sps:$4 sm:$0xff]   ;;  %v762_v26 = vld [vmem:[#allocation7 + $0x94] ss:$8 sps:$4 sm:$0xff]   ;;  %v764_v27 = vld [vmem:[#allocation7 + $0x90] ss:$8 sps:$4 sm:$0xff]  }
  0x53   :  { %647 = vmatmul.mubr.msk.bf16.vlgmr.msra.gmra.mrb[0].mxu0 %vm122_vm0, %v85_v10  ;;  %383 = vmatprep.subr.bf16.mxu1 %v741_v12  ;;  %v765_v28 = vld [vmem:[#allocation7 + $0xa4] ss:$8 sps:$4 sm:$0xff]   ;;  %v767_v29 = vld [vmem:[#allocation7 + $0xa0] ss:$8 sps:$4 sm:$0xff]   ;;  %v768_v30 = vld [vmem:[#allocation7 + $0xb4] ss:$8 sps:$4 sm:$0xff]  }
  0x54   :  { %v770_v31 = vld [vmem:[#allocation7 + $0xb0] ss:$8 sps:$4 sm:$0xff]   ;;  %v771_v32 = vld [vmem:[#allocation7 + $0xc4] ss:$8 sps:$4 sm:$0xff]   ;;  %v773_v33 = vld [vmem:[#allocation7 + $0xc0] ss:$8 sps:$4 sm:$0xff]  }
  0x55   :  { %v774_v34 = vld [vmem:[#allocation7 + $0xd4] ss:$8 sps:$4 sm:$0xff]   ;;  %v776_v35 = vld [vmem:[#allocation7 + $0xd0] ss:$8 sps:$4 sm:$0xff]   ;;  %v777_v36 = vld [vmem:[#allocation7 + $0xe4] ss:$8 sps:$4 sm:$0xff]  }
  0x56   :  { %384 = vmatpush1.bf16.msra.mxu1 %v743_v13  ;;  %v779_v37 = vld [vmem:[#allocation7 + $0xe0] ss:$8 sps:$4 sm:$0xff]   ;;  %v780_v38 = vld [vmem:[#allocation7 + $0xf4] ss:$8 sps:$4 sm:$0xff]   ;;  %v782_v39 = vld [vmem:[#allocation7 + $0xf0] ss:$8 sps:$4 sm:$0xff]  }
  0x57   :  { %385 = vmatprep.subr.bf16.mxu1 %v744_v14  ;;  %v783_v40 = vld [vmem:[#allocation8 + $0x40] sm:$0xff]   ;;  %v785_v42 = vld [vmem:[#allocation8 + $0x48] sm:$0xff]   ;;  %v787_v44 = vld [vmem:[#allocation8 + $0x50] sm:$0xff]   ;;  %v93_v52 = vshrl.u32 %v92_v51, 7 }
  0x58   :  { %v784_v41 = vld [vmem:[#allocation8] sm:$0xff]   ;;  %697 = vmatprep.subr.bf16.mxu0 %v783_v40  ;;  %v786_v43 = vld [vmem:[#allocation8 + $0x8] sm:$0xff]   ;;  %v788_v45 = vld [vmem:[#allocation8 + $0x10] sm:$0xff]  }
  0x59   :  { %698 = vmatpush3.bf16.msra.mxu0 %v784_v41  ;;  %v789_v46 = vld [vmem:[#allocation8 + $0x58] sm:$0xff]   ;;  %v791_v48 = vld [vmem:[#allocation8 + $0x60] sm:$0xff]   ;;  %v793_v50 = vld [vmem:[#allocation8 + $0x68] sm:$0xff]   ;;  %v94_v53 = vsub.s32 0, %v93_v52  ;;  %v98_v55 = vsub.s32 1, %v93_v52 }
  0x5a   :  { %386 = vmatpush1.bf16.msra.mxu1 %v746_v15  ;;  %699 = vmatprep.subr.bf16.mxu0 %v785_v42  ;;  %v790_v47 = vld [vmem:[#allocation8 + $0x18] sm:$0xff]   ;;  %v792_v49 = vld [vmem:[#allocation8 + $0x20] sm:$0xff]   ;;  %v90_v54 = vld [vmem:[%s1072_s2] sm:$0x3] }
  0x5b   :  { %387 = vmatprep.subr.bf16.mxu1 %v747_v16  ;;  %v95_v56 = vrot.slane %v90_v54, %v94_v53  ;;  %v99_v57 = vrot.slane %v90_v54, %v98_v55  ;;  %v794_v8 = vld [vmem:[#allocation8 + $0x28] sm:$0xff]   ;;  %v795_v9 = vld [vmem:[#allocation8 + $0x70] sm:$0xff]   ;;  %v797_v11 = vld [vmem:[#allocation8 + $0x78] sm:$0xff]  }
  0x5c   :  { %v796_v10 = vld [vmem:[#allocation8 + $0x30] sm:$0xff]   ;;  %v798_v12 = vld [vmem:[#allocation8 + $0x38] sm:$0xff]  }
  0x5d   :  { %700 = vmatpush3.bf16.msra.mxu0 %v786_v43  ;;  %v207_v13 = vld [vmem:[%s1074_s4] sm:$0x3] }
  0x5e   :  { %388 = vmatpush1.bf16.msra.mxu1 %v749_v17  ;;  %701 = vmatprep.subr.bf16.mxu0 %v787_v44  ;;  %v212_v14 = vrot.slane %v207_v13, %v94_v53  ;;  %v216_v15 = vrot.slane %v207_v13, %v98_v55 }
  0x5f   :  { %389 = vmatprep.subr.bf16.mxu1 %v750_v18 }
  0x61   :  { %702 = vmatpush3.bf16.msra.mxu0 %v788_v45 }
  0x62   :  { %390 = vmatpush1.bf16.msra.mxu1 %v752_v19  ;;  %703 = vmatprep.subr.bf16.mxu0 %v789_v46 }
  0x63   :  { %391 = vmatprep.subr.bf16.mxu1 %v753_v20 }
  0x65   :  { %704 = vmatpush3.bf16.msra.mxu0 %v790_v47 }
  0x66   :  { %392 = vmatpush1.bf16.msra.mxu1 %v755_v21  ;;  %705 = vmatprep.subr.bf16.mxu0 %v791_v48 }
  0x67   :  { %393 = vmatprep.subr.bf16.mxu1 %v756_v22 }
  0x69   :  { %706 = vmatpush3.bf16.msra.mxu0 %v792_v49 }
  0x6a   :  { %394 = vmatpush1.bf16.msra.mxu1 %v758_v23  ;;  %707 = vmatprep.subr.bf16.mxu0 %v793_v50 }
  0x6b   :  { %395 = vmatprep.subr.bf16.mxu1 %v759_v24 }
  0x6d   :  { %708 = vmatpush3.bf16.msra.mxu0 %v794_v8 }
  0x6e   :  { %396 = vmatpush1.bf16.msra.mxu1 %v761_v25  ;;  %709 = vmatprep.subr.bf16.mxu0 %v795_v9 }
  0x6f   :  { %397 = vmatprep.subr.bf16.mxu1 %v762_v26 }
  0x71   :  { %710 = vmatpush3.bf16.msra.mxu0 %v796_v10 }
  0x72   :  { %398 = vmatpush1.bf16.msra.mxu1 %v764_v27  ;;  %711 = vmatprep.subr.bf16.mxu0 %v797_v11 }
  0x73   :  { %399 = vmatprep.subr.bf16.mxu1 %v765_v28 }
  0x75   :  { %712 = vmatpush3.bf16.msra.mxu0 %v798_v12 }
  0x76   :  { %400 = vmatpush1.bf16.msra.mxu1 %v767_v29 }
  0x77   :  { %401 = vmatprep.subr.bf16.mxu1 %v768_v30 }
  0x7a   :  { %402 = vmatpush1.bf16.msra.mxu1 %v770_v31 }
  0x7b   :  { %403 = vmatprep.subr.bf16.mxu1 %v771_v32  ;;  %v680_v32 = vld [vmem:[%s1076_s6] ss:$0 sm:$0xff]  ;;  %s934_s6 = smov [#allocation10]  }
  0x7c   :  { %s629_s9 = sshll.u32 %s934_s6, 4  ;;  %s630_s9 = int_to_ptr.vmem [resolvable:$true] %s629_s9 }
  0x7d   :  { %s895_s10 = scalar_lea.vmem %s630_s9, 256  ;;  %p900_p5 = scmp.lt.s32.totalorder %s630_s9, %s630_s9 }
  0x7e   :  { %404 = vmatpush1.bf16.msra.mxu1 %v773_v33  ;;  %p896_p4 = scmp.ne.s32.totalorder %s630_s9, %s895_s10  ;;  %p901_p6 = scmp.lt.s32.totalorder %s895_s10, %s895_s10 }
  0x7f   :  { %405 = vmatprep.subr.bf16.mxu1 %v774_v34 }
  0x80   :  { %p902_p7 = por %p901_p6, %p900_p5 }
  0x82   :  { %406 = vmatpush1.bf16.msra.mxu1 %v776_v35  ;;  %p903_p8 = pnand %p902_p7, %p896_p4 }
  0x83   :  { %407 = vmatprep.subr.bf16.mxu1 %v777_v36 }
  0x86   :  { %408 = vmatpush1.bf16.msra.mxu1 %v779_v37 }
  0x87   :  { %409 = vmatprep.subr.bf16.mxu1 %v780_v38 }
  0x8a   :  { %410 = vmatpush1.bf16.msra.mxu1 %v782_v39 }
 0x126   :  { %v160_v58 = vpop.f32.mrb[0].mxu0 }
 0x127   :  { %v161_v59 = vadd.f32 %v160_v58, %v95_v56  ;;  %v162_v60 = vpop.f32.mrb[1].mxu0 }
 0x128   :  { %v163_v61 = vadd.f32 %v162_v60, %v99_v57  ;;  %v164_v62 = vpop.f32.mrb[2].mxu0 }
 0x129   :  { %v165_v63 = vadd.f32 %v164_v62, %v95_v56  ;;  %v166_v0 = vpop.f32.mrb[3].mxu0  ;;  %v169_v2 = vmax.f32 %v161_v59, 0.0 }
 0x12a   :  { %v167_v1 = vadd.f32 %v166_v0, %v99_v57  ;;  %v170_v4 = vmax.f32 %v163_v61, 0.0 }
 0x12b   :  { %v171_v3 = vmax.f32 %v165_v63, 0.0 }
 0x12c   :  { %v172_v5 = vmax.f32 %v167_v1, 0.0 }
 0x12d   :  { %v173_v6 = vpack.c.bf16 %v171_v3, %v169_v2 }
 0x12e   :  { %v174_v7 = vpack.c.bf16 %v172_v5, %v170_v4 }
 0x130   :  { %411 = vmatprep.mubr.bf16.mxu1 %v174_v7 }
 0x131   :  { %412 = vmatmul.mubr.bf16.vlgmr.msra.gmra.mrb[0].mxu1 %v173_v6 }
 0x204   :  { %v413_v16 = vpop.f32.mrb[0].mxu1 }
 0x205   :  { %v414_v17 = vadd.f32 %v413_v16, %v212_v14  ;;  %v415_v18 = vpop.f32.mrb[1].mxu1 }
 0x206   :  { %v416_v19 = vadd.f32 %v415_v18, %v216_v15  ;;  %v417_v20 = vpop.f32.mrb[2].mxu1 }
 0x207   :  { %v418_v21 = vadd.f32 %v417_v20, %v212_v14  ;;  %v419_v22 = vpop.f32.mrb[3].mxu1  ;;  %v422_v24 = vmax.f32 %v414_v17, 0.0 }
 0x208   :  { %v420_v23 = vadd.f32 %v419_v22, %v216_v15  ;;  %v423_v26 = vmax.f32 %v416_v19, 0.0 }
 0x209   :  { %v424_v25 = vmax.f32 %v418_v21, 0.0 }
 0x20a   :  { %v425_v27 = vmax.f32 %v420_v23, 0.0 }
 0x20b   :  { %v426_v28 = vpack.c.bf16 %v424_v25, %v422_v24 }
 0x20c   :  { %v427_v29 = vpack.c.bf16 %v425_v27, %v423_v26 }
 0x20e   :  { %595 = vmatprep.mubr.bf16.mxu0 %v427_v29 }
 0x20f   :  { %596 = vmatmul.mubr.bf16.vlgmr.msra.gmra.mrb[4].mxu0 %v426_v28 }
 0x2e2   :  { %v713_v30 = vpop.f32.mrb[4].mxu0 }
 0x2e3   :  { %v714_v31 = vpop.f32.mrb[5].mxu0 }
 0x2e4   :  { %v715_v33 = vadd.f32 %v714_v31, %v713_v30  ;;  %v716_v34 = vpop.f32.mrb[6].mxu0 }
 0x2e5   :  { %v717_v35 = vpop.f32.mrb[7].mxu0 }
 0x2e6   :  { %v718_v36 = vadd.f32 %v717_v35, %v716_v34  ;;  %v598_v37 = vadd.f32 %v715_v33, %v680_v32 }
 0x2e8   :  { %604 = vmax.xlane.f32.xlu0 %v598_v37  ;;  %v601_v38 = vadd.f32 %v718_v36, %v680_v32 }
 0x2ec   :  { %606 = vmax.xlane.f32.xlu0 %v601_v38 }
 0x375   :  { %v605_v39 = vpop.xlane.xlu0 %604 }
 0x376   :  { %v608_v40 = vsub.f32 %v598_v37, %v605_v39 }
 0x378   :  { %v610_v41 = vmul.f32 1.442695, %v608_v40 }
 0x379   :  { %v607_v42 = vpop.xlane.xlu0 %606 }
 0x37a   :  { %799 = vpow2.f32 %v610_v41  ;;  %v609_v43 = vsub.f32 %v601_v38, %v607_v42 }
 0x37c   :  { %v612_v44 = vmul.f32 1.442695, %v609_v43 }
 0x37e   :  { %801 = vpow2.f32 %v612_v44 }
 0x384   :  { %v800_v45 = vpop.eup %799 }
 0x385   :  { %614 = vadd.xlane.f32.xlu1 %v800_v45 }
 0x388   :  { %v802_v46 = vpop.eup %801 }
 0x389   :  { %616 = vadd.xlane.f32.xlu1 %v802_v46 }
 0x412   :  { %v615_v47 = vpop.xlane.xlu1 %614 }
 0x413   :  { %803 = vrcp.f32 %v615_v47 }
 0x416   :  { %v617_v48 = vpop.xlane.xlu1 %616 }
 0x417   :  { %805 = vrcp.f32 %v617_v48 }
 0x41d   :  { %v804_v49 = vpop.eup %803 }
 0x41e   :  { %v619_v50 = vmul.f32 %v804_v49, %v800_v45 }
 0x420   :  { %622 = vst [vmem:[#allocation10] sm:$0xff] %v619_v50 }
 0x421   :  { %v806_v51 = vpop.eup %805 }
 0x422   :  { %v621_v52 = vmul.f32 %v806_v51, %v802_v46 }
 0x424   :  { %623 = vst [vmem:[#allocation10 + $0x8] sm:$0xff] %v621_v52 }
 0x425   :  { %906 = shalt.err (!%p903_p8)
}
 0x426   :  { %s907_s15 = scalar_lea.hbm %s1077_s7, 256 }
 0x427   :  { %p908_p9 = scmp.ne.s32.totalorder %s1077_s7, %s907_s15  ;;  %p911_p10 = scmp.lt.u32.totalorder %s907_s15, %s1077_s7 }
 0x429   :  { %p913_p11 = pnand %p911_p10, %p908_p9 }
 0x42b   :  { %916 = shalt.err (!%p913_p11)
}
 0x42c   :  { %635 = dma.vmem_to_hbm [thread:$0]  %s630_s9, 256, %s1077_s7, [#allocation4], %s927_s13, %s927_s13, %s928_s14  }
 0x42d   :  { %923 = dma.done.wait [#allocation4], 256  }
 0x42e   :  { %924 = vsyncadd [#allocation4], 4294967040 }
 0x42f   :  { %639 = vsyncpa [#allocation3], 1 }
 0x430   :  { %640 = vsyncpa [#allocation6], 1 }
 0x431   :  { %641 = vsyncpa [#allocation9], 1 }
 0x432   :  { %642 = vsyncpa [#allocation4], 1 }

</bundles_post_ra>
